<compile_context>
chip_gen: v5e
topology: v5e:2x2
jax: 0.10.0
libtpu: 0.0.40
codegen_flags: <defaults>
</compile_context>

<pallas_src>
import numpy as np
import jax
import jax.numpy as jnp
from jax import lax
from jax.experimental import pallas as pl
from jax.experimental.pallas import tpu as pltpu

EPS = 1e-5


def _round_up(v, m):
    return ((v + m - 1) // m) * m


def _full_spec(shape):
    n = len(shape)
    return pl.BlockSpec(shape, lambda i, _n=n: (0,) * _n)


def _embed(v, gh, gw, lo, stride, width):
    """(..., N, Hv, Wv) -> (..., width): v[..., n, i, j] lands at column
    n*stride + (i+lo)*gw + (j+lo); every other column is zero."""
    *lead, n, hv, wv = v.shape
    z = [(0, 0)] * len(lead)
    vp = jnp.pad(v, z + [(0, 0), (lo, gh - hv - lo), (lo, gw - wv - lo)])
    vp = vp.reshape(tuple(lead) + (n, gh * gw))
    vp = jnp.pad(vp, z + [(0, 0), (0, stride - gh * gw)])
    vp = vp.reshape(tuple(lead) + (n * stride,))
    return jnp.pad(vp, z + [(0, width - n * stride)])


# -------------------------------- fused forward --------------------------------

def modified_block_forward(x_nchw, params, *, kernel_size, stride1, stride2, padding):
    N, Cin, H, W = x_nchw.shape
    Cout = params["w1"].shape[0]
    k = kernel_size
    assert stride2 == 1, "fused kernel assumes a stride-1 second conv"

    H1 = (H + 2 * padding - k) // stride1 + 1
    W1 = (W + 2 * padding - k) // stride1 + 1
    H2 = (H1 + 2 * padding - k) // stride2 + 1
    W2 = (W1 + 2 * padding - k) // stride2 + 1
    Hp = (H - 1) // 2 + 1
    Wp = (W - 1) // 2 + 1
    assert (Hp, Wp) == (H2, W2), "pool / conv2 spatial shapes must match"

    Gh, Gw = H1 + 2 * padding, W1 + 2 * padding     # conv2's zero-padded input grid
    G = Gh * Gw
    S = _round_up(G, 128)                           # per-sample column stride (lane aligned)
    Wout = _round_up((N - 1) * S + G, 128)          # matmul / output width (lane dense)
    WB = _round_up(Wout + (k - 1) * (Gw + 1), 128)  # h_lu2 buffer width incl. tap shifts
    KKC = k * k * Cin
    n_bn1 = N * H * W
    n_bn2 = N * H1 * W1
    inv_n1 = 1.0 / n_bn1
    inv_n2 = 1.0 / n_bn2
    f32, bf16 = jnp.float32, jnp.bfloat16

    # ---------------- wrapper-side layout glue (touches only raw input / params) ----------------
    xc = jnp.transpose(x_nchw, (1, 0, 2, 3)).astype(f32)            # (Cin, N, H, W)
    x_cm = xc.reshape(Cin, n_bn1)                                   # BN1 stats input (f32, lane-dense)

    def tap_patches(src):
        cols = [src[:, :, kh:kh + stride1 * H1:stride1, kw:kw + stride1 * W1:stride1]
                for kh in range(k) for kw in range(k)]
        return jnp.stack(cols, axis=0).reshape(KKC, N, H1, W1)      # rows: tap-major, channel-minor

    pad4 = ((0, 0), (0, 0), (padding, padding), (padding, padding))
    # conv1 im2col patches of the RAW input, bf16 (they only feed the bf16 MXU matmul).
    xp1 = _embed(tap_patches(jnp.pad(xc, pad4)), Gh, Gw, padding, S, WB).astype(bf16)   # (KKC, WB)
    mh = _embed(jnp.ones((1, N, H1, W1), f32), Gh, Gw, padding, S, WB)                  # (1, WB)
    xpool = _embed(xc[:, :, ::2, ::2], Gh, Gw, 0, S, Wout).astype(bf16)                 # (Cin, Wout)

    # Tiny int32 index vectors for the in-kernel conv1 zero-padding mask
    # (replaces the full-size f32 mask previously DMA'd from HBM).
    col = jnp.arange(WB, dtype=jnp.int32)
    p = col % S
    srow = (((p // Gw) - padding) * stride1 - padding).reshape(1, WB)                   # (1, WB)
    scol = (((p % Gw) - padding) * stride1 - padding).reshape(1, WB)                    # (1, WB)
    tap = jnp.arange(KKC, dtype=jnp.int32) // Cin
    khr = (tap // k).reshape(KKC, 1)                                                    # (KKC, 1)
    kwr = (tap % k).reshape(KKC, 1)                                                     # (KKC, 1)

    w1_lhs = jnp.transpose(params["w1"], (0, 2, 3, 1)).reshape(Cout, KKC).astype(bf16)
    w2p_lhs = jnp.concatenate(
        [jnp.transpose(params["w2"], (0, 2, 3, 1)).reshape(Cout, k * k * Cout),
         params["wp"].reshape(Cout, Cin)], axis=1).astype(bf16)                         # (Cout, k*k*Cout+Cin)

    g1 = params["gamma1"].reshape(Cin, 1)
    bt1 = params["beta1"].reshape(Cin, 1)
    b1 = params["b1"].reshape(Cout, 1)
    g2 = params["gamma2"].reshape(Cout, 1)
    bt2 = params["beta2"].reshape(Cout, 1)
    b2p = (params["b2"] + params["bp"]).reshape(Cout, 1)

    offs = [kh * Gw + kw for kh in range(k) for kw in range(k)]

    # ------------------------------------ fused kernel ------------------------------------
    def kernel(x_ref, xp_ref, srow_ref, scol_ref, khr_ref, kwr_ref, mh_ref, xpool_ref,
               w1_ref, w2p_ref, g1_ref, bt1_ref, b1_ref, g2_ref, bt2_ref, b2p_ref, o_ref):
        # BN1: two-pass batch stats over all N*H*W columns (f32 input).
        x = x_ref[...]
        mean1 = jnp.sum(x, axis=1, keepdims=True) * inv_n1
        xc0 = x - mean1
        var1 = jnp.sum(xc0 * xc0, axis=1, keepdims=True) * inv_n1
        scale1 = g1_ref[...] * lax.rsqrt(var1 + EPS)                  # (Cin, 1)
        shift1 = bt1_ref[...] - mean1 * scale1

        # Replicate the per-channel BN1 affine onto the k*k*Cin patch rows (sublane tile,
        # no MXU matmul).
        scale1r = jnp.tile(scale1, (k * k, 1))                        # (KKC, 1)
        shift1r = jnp.tile(shift1, (k * k, 1))

        # conv1 zero-padding validity mask, generated in-kernel (VPU) from tiny index vectors:
        # valid iff the tap's source pixel lies inside the un-padded HxW input.
        sr = srow_ref[...] + khr_ref[...]                             # (KKC, WB) int32
        sc = scol_ref[...] + kwr_ref[...]
        valid = (sr >= 0) & (sr < H) & (sc >= 0) & (sc < W)

        # h_lu1 im2col patches: BN1 affine + ReLU on x patches; mask restores conv1's zero pad.
        h1p = jnp.where(valid,
                        jnp.maximum(xp_ref[...].astype(jnp.float32) * scale1r + shift1r, 0.0),
                        0.0)

        # conv1 as one lane-dense MXU matmul (bf16 operands, f32 accumulation) + bias.
        cv1 = jnp.dot(w1_ref[...], h1p.astype(jnp.bfloat16),
                      preferred_element_type=jnp.float32) + b1_ref[...]       # (Cout, WB)

        # BN2: masked two-pass batch stats over the n_bn2 valid columns, then ReLU.
        mh_v = mh_ref[...]
        cvm = cv1 * mh_v
        mean2 = jnp.sum(cvm, axis=1, keepdims=True) * inv_n2
        diff = (cv1 - mean2) * mh_v
        var2 = jnp.sum(diff * diff, axis=1, keepdims=True) * inv_n2
        scl2 = g2_ref[...] * lax.rsqrt(var2 + EPS)
        # h2b holds h_lu2 on zero-padded per-sample (Gh, Gw) grids flattened along lanes,
        # cast to bf16 ONCE before the k*k tap extractions (half the bytes moved).
        h2b = (jnp.maximum(diff * scl2 + bt2_ref[...], 0.0) * mh_v).astype(jnp.bfloat16)  # (Cout, WB)

        # Pool branch: BN1 affine + ReLU on the stride-2 subsampled x (same output columns).
        hpool = jnp.maximum(xpool_ref[...].astype(jnp.float32) * scale1 + shift1,
                            0.0).astype(jnp.bfloat16)                        # (Cin, Wout)

        # conv2 + 1x1/s2 pool shortcut merged into a single MXU matmul with the summed bias.
        # conv2's im2col is k*k static lane shifts of the VMEM-resident h2b.
        rhs = jnp.concatenate([h2b[:, o:o + Wout] for o in offs] + [hpool], axis=0)
        o_ref[...] = jnp.dot(w2p_ref[...], rhs,
                             preferred_element_type=jnp.float32) + b2p_ref[...]

    args = (x_cm, xp1, srow, scol, khr, kwr, mh, xpool, w1_lhs, w2p_lhs,
            g1, bt1, b1, g2, bt2, b2p)
    cost = pl.CostEstimate(
        flops=int(2 * Cout * KKC * WB + 2 * Cout * (k * k * Cout + Cin) * Wout
                  + 12 * KKC * WB + 12 * Cout * WB),
        transcendentals=int(Cin + Cout),
        bytes_accessed=int(sum(a.size * a.dtype.itemsize for a in args) + Cout * Wout * 4),
    )
    out_emb = pl.pallas_call(
        kernel,
        out_shape=jax.ShapeDtypeStruct((Cout, Wout), f32),
        grid=(1,),
        in_specs=[_full_spec(a.shape) for a in args],
        out_specs=_full_spec((Cout, Wout)),
        compiler_params=pltpu.CompilerParams(
            dimension_semantics=("arbitrary",),
            vmem_limit_bytes=32 * 1024 * 1024),
        cost_estimate=cost,
    )(*args)

    # Un-embed: valid output columns sit at n*S + i*Gw + j.
    if Wout < N * S:
        out_emb = jnp.pad(out_emb, ((0, 0), (0, N * S - Wout)))
    out = out_emb.reshape(Cout, N, S)[:, :, :G].reshape(Cout, N, Gh, Gw)[:, :, :H2, :W2]
    return jnp.transpose(out, (1, 0, 2, 3))                                   # -> NCHW


# ---------------------------------- pure-JAX reference ----------------------------------

def reference_forward(x, params, *, kernel_size, stride1, stride2, padding):
    def bn(h, g, b):
        mean = jnp.mean(h, axis=(0, 2, 3), keepdims=True)
        var = jnp.mean((h - mean) ** 2, axis=(0, 2, 3), keepdims=True)
        return (h - mean) / jnp.sqrt(var + EPS) * g.reshape(1, -1, 1, 1) + b.reshape(1, -1, 1, 1)

    def conv(h, w, b, stride, pad):
        y = lax.conv_general_dilated(h, w, (stride, stride), [(pad, pad), (pad, pad)],
                                     dimension_numbers=("NCHW", "OIHW", "NCHW"),
                                     precision=lax.Precision.HIGHEST)
        return y + b.reshape(1, -1, 1, 1)

    h_lu1 = jnp.maximum(bn(x, params["gamma1"], params["beta1"]), 0.0)
    h_cv1 = conv(h_lu1, params["w1"], params["b1"], stride1, padding)
    h_lu2 = jnp.maximum(bn(h_cv1, params["gamma2"], params["beta2"]), 0.0)
    h_cv2 = conv(h_lu2, params["w2"], params["b2"], stride2, padding)
    h_pool = conv(h_lu1, params["wp"], params["bp"], 2, 0)
    return h_pool + h_cv2


# --------------------------------------- params -----------------------------------------

def init_params(key, in_channels, out_channels, k):
    ks = jax.random.split(key, 10)
    f32 = jnp.float32
    return {
        "gamma1": 1.0 + 0.1 * jax.random.normal(ks[0], (in_channels,), f32),
        "beta1": 0.1 * jax.random.normal(ks[1], (in_channels,), f32),
        "w1": 0.1 * jax.random.normal(ks[2], (out_channels, in_channels, k, k), f32),
        "b1": 0.1 * jax.random.normal(ks[3], (out_channels,), f32),
        "gamma2": 1.0 + 0.1 * jax.random.normal(ks[4], (out_channels,), f32),
        "beta2": 0.1 * jax.random.normal(ks[5], (out_channels,), f32),
        "w2": 0.1 * jax.random.normal(ks[6], (out_channels, out_channels, k, k), f32),
        "b2": 0.1 * jax.random.normal(ks[7], (out_channels,), f32),
        "wp": 0.1 * jax.random.normal(ks[8], (out_channels, in_channels, 1, 1), f32),
        "bp": 0.1 * jax.random.normal(ks[9], (out_channels,), f32),
    }


if __name__ == "__main__":
    key = jax.random.PRNGKey(0)
    kx, kp = jax.random.split(key)

    N, Cin, Cout, H, W = 2, 4, 8, 16, 16
    kernel_size, stride1, stride2, padding = 3, 2, 1, 1

    x = jax.random.normal(kx, (N, Cin, H, W), jnp.float32)
    params = init_params(kp, Cin, Cout, kernel_size)

    # Keep the wrapper-side layout glue under the same jit as the pallas_call.
    fwd = jax.jit(lambda xx, pp: modified_block_forward(
        xx, pp, kernel_size=kernel_size, stride1=stride1, stride2=stride2, padding=padding))

    out = jax.block_until_ready(fwd(x, params))

    ref = jax.block_until_ready(
        reference_forward(x, params, kernel_size=kernel_size,
                          stride1=stride1, stride2=stride2, padding=padding))

    assert out.shape == ref.shape == (N, Cout, H // 2, W // 2), (out.shape, ref.shape)
    # bf16 MXU operands vs f32 HIGHEST reference -> ~1e-2 scale differences expected.
    np.testing.assert_allclose(np.asarray(out), np.asarray(ref), rtol=3e-2, atol=3e-2)
    print("KERNEL_OK")
</pallas_src>

<mosaic_0001>
module attributes {stable_mosaic.version = 11 : i64} {
  func.func @kernel(%arg0: i32, %arg1: memref<4x512xf32, #tpu.memory_space<vmem>>, %arg2: memref<36x384xbf16, #tpu.memory_space<vmem>>, %arg3: memref<1x384xi32, #tpu.memory_space<vmem>>, %arg4: memref<1x384xi32, #tpu.memory_space<vmem>>, %arg5: memref<36x1xi32, #tpu.memory_space<vmem>>, %arg6: memref<36x1xi32, #tpu.memory_space<vmem>>, %arg7: memref<1x384xf32, #tpu.memory_space<vmem>>, %arg8: memref<4x256xbf16, #tpu.memory_space<vmem>>, %arg9: memref<8x36xbf16, #tpu.memory_space<vmem>>, %arg10: memref<8x76xbf16, #tpu.memory_space<vmem>>, %arg11: memref<4x1xf32, #tpu.memory_space<vmem>>, %arg12: memref<4x1xf32, #tpu.memory_space<vmem>>, %arg13: memref<8x1xf32, #tpu.memory_space<vmem>>, %arg14: memref<8x1xf32, #tpu.memory_space<vmem>>, %arg15: memref<8x1xf32, #tpu.memory_space<vmem>>, %arg16: memref<8x1xf32, #tpu.memory_space<vmem>>, %arg17: memref<8x256xf32, #tpu.memory_space<vmem>>) attributes {dimension_semantics = [#tpu.dimension_semantics<arbitrary>], iteration_bounds = array<i64: 1>, scalar_prefetch = 0 : i64, scratch_operands = 0 : i64, tpu.core_type = #tpu.core_type<tc>, window_params = [{pipeline_mode = #tpu.pipeline_mode<synchronous>, transform_indices = @transform_0, window_bounds = array<i64: 4, 512>}, {pipeline_mode = #tpu.pipeline_mode<synchronous>, transform_indices = @transform_1, window_bounds = array<i64: 36, 384>}, {pipeline_mode = #tpu.pipeline_mode<synchronous>, transform_indices = @transform_2, window_bounds = array<i64: 1, 384>}, {pipeline_mode = #tpu.pipeline_mode<synchronous>, transform_indices = @transform_3, window_bounds = array<i64: 1, 384>}, {pipeline_mode = #tpu.pipeline_mode<synchronous>, transform_indices = @transform_4, window_bounds = array<i64: 36, 1>}, {pipeline_mode = #tpu.pipeline_mode<synchronous>, transform_indices = @transform_5, window_bounds = array<i64: 36, 1>}, {pipeline_mode = #tpu.pipeline_mode<synchronous>, transform_indices = @transform_6, window_bounds = array<i64: 1, 384>}, {pipeline_mode = #tpu.pipeline_mode<synchronous>, transform_indices = @transform_7, window_bounds = array<i64: 4, 256>}, {pipeline_mode = #tpu.pipeline_mode<synchronous>, transform_indices = @transform_8, window_bounds = array<i64: 8, 36>}, {pipeline_mode = #tpu.pipeline_mode<synchronous>, transform_indices = @transform_9, window_bounds = array<i64: 8, 76>}, {pipeline_mode = #tpu.pipeline_mode<synchronous>, transform_indices = @transform_10, window_bounds = array<i64: 4, 1>}, {pipeline_mode = #tpu.pipeline_mode<synchronous>, transform_indices = @transform_11, window_bounds = array<i64: 4, 1>}, {pipeline_mode = #tpu.pipeline_mode<synchronous>, transform_indices = @transform_12, window_bounds = array<i64: 8, 1>}, {pipeline_mode = #tpu.pipeline_mode<synchronous>, transform_indices = @transform_13, window_bounds = array<i64: 8, 1>}, {pipeline_mode = #tpu.pipeline_mode<synchronous>, transform_indices = @transform_14, window_bounds = array<i64: 8, 1>}, {pipeline_mode = #tpu.pipeline_mode<synchronous>, transform_indices = @transform_15, window_bounds = array<i64: 8, 1>}, {pipeline_mode = #tpu.pipeline_mode<synchronous>, transform_indices = @transform_16, window_bounds = array<i64: 8, 256>}]} {
    %c0 = arith.constant 0 : index
    %c0_0 = arith.constant 0 : index
    %0 = vector.load %arg1[%c0, %c0_0] : memref<4x512xf32, #tpu.memory_space<vmem>>, vector<4x512xf32>
    %cst = arith.constant dense<0.000000e+00> : vector<4xf32>
    %1 = vector.multi_reduction <add>, %0, %cst [1] : vector<4x512xf32> to vector<4xf32>
    %2 = vector.shape_cast %1 : vector<4xf32> to vector<4x1xf32>
    %cst_1 = arith.constant 0.001953125 : f32
    %3 = vector.broadcast %cst_1 : f32 to vector<4x1xf32>
    %4 = arith.mulf %2, %3 : vector<4x1xf32>
    %5 = vector.broadcast %4 : vector<4x1xf32> to vector<4x512xf32>
    %6 = arith.subf %0, %5 : vector<4x512xf32>
    %7 = arith.mulf %6, %6 : vector<4x512xf32>
    %cst_2 = arith.constant dense<0.000000e+00> : vector<4xf32>
    %8 = vector.multi_reduction <add>, %7, %cst_2 [1] : vector<4x512xf32> to vector<4xf32>
    %9 = vector.shape_cast %8 : vector<4xf32> to vector<4x1xf32>
    %cst_3 = arith.constant 0.001953125 : f32
    %10 = vector.broadcast %cst_3 : f32 to vector<4x1xf32>
    %11 = arith.mulf %9, %10 : vector<4x1xf32>
    %c0_4 = arith.constant 0 : index
    %c0_5 = arith.constant 0 : index
    %12 = vector.load %arg11[%c0_4, %c0_5] : memref<4x1xf32, #tpu.memory_space<vmem>>, vector<4x1xf32>
    %cst_6 = arith.constant 9.99999974E-6 : f32
    %13 = vector.broadcast %cst_6 : f32 to vector<4x1xf32>
    %14 = arith.addf %11, %13 : vector<4x1xf32>
    %15 = math.rsqrt %14 : vector<4x1xf32>
    %16 = arith.mulf %12, %15 : vector<4x1xf32>
    %c0_7 = arith.constant 0 : index
    %c0_8 = arith.constant 0 : index
    %17 = vector.load %arg12[%c0_7, %c0_8] : memref<4x1xf32, #tpu.memory_space<vmem>>, vector<4x1xf32>
    %18 = arith.mulf %4, %16 : vector<4x1xf32>
    %19 = arith.subf %17, %18 : vector<4x1xf32>
    %20 = tpu.concatenate %16, %16, %16, %16, %16, %16, %16, %16, %16 in 0 : vector<4x1xf32>, vector<4x1xf32>, vector<4x1xf32>, vector<4x1xf32>, vector<4x1xf32>, vector<4x1xf32>, vector<4x1xf32>, vector<4x1xf32>, vector<4x1xf32> -> vector<36x1xf32>
    %21 = tpu.concatenate %19, %19, %19, %19, %19, %19, %19, %19, %19 in 0 : vector<4x1xf32>, vector<4x1xf32>, vector<4x1xf32>, vector<4x1xf32>, vector<4x1xf32>, vector<4x1xf32>, vector<4x1xf32>, vector<4x1xf32>, vector<4x1xf32> -> vector<36x1xf32>
    %c0_9 = arith.constant 0 : index
    %c0_10 = arith.constant 0 : index
    %22 = vector.load %arg3[%c0_9, %c0_10] : memref<1x384xi32, #tpu.memory_space<vmem>>, vector<1x384xi32>
    %c0_11 = arith.constant 0 : index
    %c0_12 = arith.constant 0 : index
    %23 = vector.load %arg5[%c0_11, %c0_12] : memref<36x1xi32, #tpu.memory_space<vmem>>, vector<36x1xi32>
    %24 = vector.broadcast %22 : vector<1x384xi32> to vector<36x384xi32>
    %25 = vector.broadcast %23 : vector<36x1xi32> to vector<36x384xi32>
    %26 = arith.addi %24, %25 : vector<36x384xi32>
    %c0_13 = arith.constant 0 : index
    %c0_14 = arith.constant 0 : index
    %27 = vector.load %arg4[%c0_13, %c0_14] : memref<1x384xi32, #tpu.memory_space<vmem>>, vector<1x384xi32>
    %c0_15 = arith.constant 0 : index
    %c0_16 = arith.constant 0 : index
    %28 = vector.load %arg6[%c0_15, %c0_16] : memref<36x1xi32, #tpu.memory_space<vmem>>, vector<36x1xi32>
    %29 = vector.broadcast %27 : vector<1x384xi32> to vector<36x384xi32>
    %30 = vector.broadcast %28 : vector<36x1xi32> to vector<36x384xi32>
    %31 = arith.addi %29, %30 : vector<36x384xi32>
    %c0_i32 = arith.constant 0 : i32
    %32 = vector.broadcast %c0_i32 : i32 to vector<36x384xi32>
    %33 = arith.cmpi sge, %26, %32 : vector<36x384xi32>
    %c16_i32 = arith.constant 16 : i32
    %34 = vector.broadcast %c16_i32 : i32 to vector<36x384xi32>
    %35 = arith.cmpi slt, %26, %34 : vector<36x384xi32>
    %36 = arith.andi %33, %35 : vector<36x384xi1>
    %c0_i32_17 = arith.constant 0 : i32
    %37 = vector.broadcast %c0_i32_17 : i32 to vector<36x384xi32>
    %38 = arith.cmpi sge, %31, %37 : vector<36x384xi32>
    %39 = arith.andi %36, %38 : vector<36x384xi1>
    %c16_i32_18 = arith.constant 16 : i32
    %40 = vector.broadcast %c16_i32_18 : i32 to vector<36x384xi32>
    %41 = arith.cmpi slt, %31, %40 : vector<36x384xi32>
    %42 = arith.andi %39, %41 : vector<36x384xi1>
    %c0_19 = arith.constant 0 : index
    %c0_20 = arith.constant 0 : index
    %43 = vector.load %arg2[%c0_19, %c0_20] : memref<36x384xbf16, #tpu.memory_space<vmem>>, vector<36x384xbf16>
    %44 = arith.extf %43 : vector<36x384xbf16> to vector<36x384xf32>
    %45 = vector.broadcast %20 : vector<36x1xf32> to vector<36x384xf32>
    %46 = arith.mulf %44, %45 : vector<36x384xf32>
    %47 = vector.broadcast %21 : vector<36x1xf32> to vector<36x384xf32>
    %48 = arith.addf %46, %47 : vector<36x384xf32>
    %cst_21 = arith.constant 0.000000e+00 : f32
    %49 = vector.broadcast %cst_21 : f32 to vector<36x384xf32>
    %50 = arith.maximumf %48, %49 : vector<36x384xf32>
    %cst_22 = arith.constant 0.000000e+00 : f32
    %51 = vector.broadcast %cst_22 : f32 to vector<36x384xf32>
    %52 = arith.select %42, %50, %51 : vector<36x384xi1>, vector<36x384xf32>
    %c0_23 = arith.constant 0 : index
    %c0_24 = arith.constant 0 : index
    %53 = vector.load %arg9[%c0_23, %c0_24] : memref<8x36xbf16, #tpu.memory_space<vmem>>, vector<8x36xbf16>
    %54 = arith.truncf %52 : vector<36x384xf32> to vector<36x384xbf16>
    %cst_25 = arith.constant dense<0.000000e+00> : vector<8x384xf32>
    %55 = tpu.matmul %53, %54, %cst_25 {dimension_numbers = #tpu.dot_dimension_numbers<[1], [0], [0], [1], [0, 0, 1, 1], [], []>} : vector<8x36xbf16>, vector<36x384xbf16>, vector<8x384xf32> -> vector<8x384xf32>
    %c0_26 = arith.constant 0 : index
    %c0_27 = arith.constant 0 : index
    %56 = vector.load %arg13[%c0_26, %c0_27] : memref<8x1xf32, #tpu.memory_space<vmem>>, vector<8x1xf32>
    %57 = vector.broadcast %56 : vector<8x1xf32> to vector<8x384xf32>
    %58 = arith.addf %55, %57 : vector<8x384xf32>
    %c0_28 = arith.constant 0 : index
    %c0_29 = arith.constant 0 : index
    %59 = vector.load %arg7[%c0_28, %c0_29] : memref<1x384xf32, #tpu.memory_space<vmem>>, vector<1x384xf32>
    %60 = vector.broadcast %59 : vector<1x384xf32> to vector<8x384xf32>
    %61 = arith.mulf %58, %60 : vector<8x384xf32>
    %cst_30 = arith.constant dense<0.000000e+00> : vector<8xf32>
    %62 = vector.multi_reduction <add>, %61, %cst_30 [1] : vector<8x384xf32> to vector<8xf32>
    %63 = vector.shape_cast %62 : vector<8xf32> to vector<8x1xf32>
    %cst_31 = arith.constant 7.812500e-03 : f32
    %64 = vector.broadcast %cst_31 : f32 to vector<8x1xf32>
    %65 = arith.mulf %63, %64 : vector<8x1xf32>
    %66 = vector.broadcast %65 : vector<8x1xf32> to vector<8x384xf32>
    %67 = arith.subf %58, %66 : vector<8x384xf32>
    %68 = vector.broadcast %59 : vector<1x384xf32> to vector<8x384xf32>
    %69 = arith.mulf %67, %68 : vector<8x384xf32>
    %70 = arith.mulf %69, %69 : vector<8x384xf32>
    %cst_32 = arith.constant dense<0.000000e+00> : vector<8xf32>
    %71 = vector.multi_reduction <add>, %70, %cst_32 [1] : vector<8x384xf32> to vector<8xf32>
    %72 = vector.shape_cast %71 : vector<8xf32> to vector<8x1xf32>
    %cst_33 = arith.constant 7.812500e-03 : f32
    %73 = vector.broadcast %cst_33 : f32 to vector<8x1xf32>
    %74 = arith.mulf %72, %73 : vector<8x1xf32>
    %c0_34 = arith.constant 0 : index
    %c0_35 = arith.constant 0 : index
    %75 = vector.load %arg14[%c0_34, %c0_35] : memref<8x1xf32, #tpu.memory_space<vmem>>, vector<8x1xf32>
    %cst_36 = arith.constant 9.99999974E-6 : f32
    %76 = vector.broadcast %cst_36 : f32 to vector<8x1xf32>
    %77 = arith.addf %74, %76 : vector<8x1xf32>
    %78 = math.rsqrt %77 : vector<8x1xf32>
    %79 = arith.mulf %75, %78 : vector<8x1xf32>
    %80 = vector.broadcast %79 : vector<8x1xf32> to vector<8x384xf32>
    %81 = arith.mulf %69, %80 : vector<8x384xf32>
    %c0_37 = arith.constant 0 : index
    %c0_38 = arith.constant 0 : index
    %82 = vector.load %arg15[%c0_37, %c0_38] : memref<8x1xf32, #tpu.memory_space<vmem>>, vector<8x1xf32>
    %83 = vector.broadcast %82 : vector<8x1xf32> to vector<8x384xf32>
    %84 = arith.addf %81, %83 : vector<8x384xf32>
    %cst_39 = arith.constant 0.000000e+00 : f32
    %85 = vector.broadcast %cst_39 : f32 to vector<8x384xf32>
    %86 = arith.maximumf %84, %85 : vector<8x384xf32>
    %87 = vector.broadcast %59 : vector<1x384xf32> to vector<8x384xf32>
    %88 = arith.mulf %86, %87 : vector<8x384xf32>
    %89 = arith.truncf %88 : vector<8x384xf32> to vector<8x384xbf16>
    %c0_40 = arith.constant 0 : index
    %c0_41 = arith.constant 0 : index
    %90 = vector.load %arg8[%c0_40, %c0_41] : memref<4x256xbf16, #tpu.memory_space<vmem>>, vector<4x256xbf16>
    %91 = arith.extf %90 : vector<4x256xbf16> to vector<4x256xf32>
    %92 = vector.broadcast %16 : vector<4x1xf32> to vector<4x256xf32>
    %93 = arith.mulf %91, %92 : vector<4x256xf32>
    %94 = vector.broadcast %19 : vector<4x1xf32> to vector<4x256xf32>
    %95 = arith.addf %93, %94 : vector<4x256xf32>
    %cst_42 = arith.constant 0.000000e+00 : f32
    %96 = vector.broadcast %cst_42 : f32 to vector<4x256xf32>
    %97 = arith.maximumf %95, %96 : vector<4x256xf32>
    %98 = arith.truncf %97 : vector<4x256xf32> to vector<4x256xbf16>
    %99 = vector.extract_strided_slice %89 {offsets = [0, 0], sizes = [8, 256], strides = [1, 1]} : vector<8x384xbf16> to vector<8x256xbf16>
    %100 = vector.extract_strided_slice %89 {offsets = [0, 1], sizes = [8, 256], strides = [1, 1]} : vector<8x384xbf16> to vector<8x256xbf16>
    %101 = vector.extract_strided_slice %89 {offsets = [0, 2], sizes = [8, 256], strides = [1, 1]} : vector<8x384xbf16> to vector<8x256xbf16>
    %102 = vector.extract_strided_slice %89 {offsets = [0, 10], sizes = [8, 256], strides = [1, 1]} : vector<8x384xbf16> to vector<8x256xbf16>
    %103 = vector.extract_strided_slice %89 {offsets = [0, 11], sizes = [8, 256], strides = [1, 1]} : vector<8x384xbf16> to vector<8x256xbf16>
    %104 = vector.extract_strided_slice %89 {offsets = [0, 12], sizes = [8, 256], strides = [1, 1]} : vector<8x384xbf16> to vector<8x256xbf16>
    %105 = vector.extract_strided_slice %89 {offsets = [0, 20], sizes = [8, 256], strides = [1, 1]} : vector<8x384xbf16> to vector<8x256xbf16>
    %106 = vector.extract_strided_slice %89 {offsets = [0, 21], sizes = [8, 256], strides = [1, 1]} : vector<8x384xbf16> to vector<8x256xbf16>
    %107 = vector.extract_strided_slice %89 {offsets = [0, 22], sizes = [8, 256], strides = [1, 1]} : vector<8x384xbf16> to vector<8x256xbf16>
    %108 = tpu.concatenate %99, %100, %101, %102, %103, %104, %105, %106, %107, %98 in 0 : vector<8x256xbf16>, vector<8x256xbf16>, vector<8x256xbf16>, vector<8x256xbf16>, vector<8x256xbf16>, vector<8x256xbf16>, vector<8x256xbf16>, vector<8x256xbf16>, vector<8x256xbf16>, vector<4x256xbf16> -> vector<76x256xbf16>
    %c0_43 = arith.constant 0 : index
    %c0_44 = arith.constant 0 : index
    %109 = vector.load %arg10[%c0_43, %c0_44] : memref<8x76xbf16, #tpu.memory_space<vmem>>, vector<8x76xbf16>
    %cst_45 = arith.constant dense<0.000000e+00> : vector<8x256xf32>
    %110 = tpu.matmul %109, %108, %cst_45 {dimension_numbers = #tpu.dot_dimension_numbers<[1], [0], [0], [1], [0, 0, 1, 1], [], []>} : vector<8x76xbf16>, vector<76x256xbf16>, vector<8x256xf32> -> vector<8x256xf32>
    %c0_46 = arith.constant 0 : index
    %c0_47 = arith.constant 0 : index
    %111 = vector.load %arg16[%c0_46, %c0_47] : memref<8x1xf32, #tpu.memory_space<vmem>>, vector<8x1xf32>
    %112 = vector.broadcast %111 : vector<8x1xf32> to vector<8x256xf32>
    %113 = arith.addf %110, %112 : vector<8x256xf32>
    %c0_48 = arith.constant 0 : index
    %c0_49 = arith.constant 0 : index
    %114 = vector.load %arg17[%c0_48, %c0_49] : memref<8x256xf32, #tpu.memory_space<vmem>>, vector<8x256xf32>
    tpu.vector_store %arg17[%c0_48, %c0_49], %113 {strides = array<i32>} : memref<8x256xf32, #tpu.memory_space<vmem>>, vector<8x256xf32>,
    return
  }
  func.func @transform_0(%arg0: i32) -> (i32, i32) {
    %c0_i32 = arith.constant 0 : i32
    %c0_i32_0 = arith.constant 0 : i32
    %c0_i32_1 = arith.constant 0 : i32
    return %c0_i32, %c0_i32_0 : i32, i32
  }
  func.func @transform_1(%arg0: i32) -> (i32, i32) {
    %c0_i32 = arith.constant 0 : i32
    %c0_i32_0 = arith.constant 0 : i32
    %c0_i32_1 = arith.constant 0 : i32
    return %c0_i32, %c0_i32_0 : i32, i32
  }
  func.func @transform_2(%arg0: i32) -> (i32, i32) {
    %c0_i32 = arith.constant 0 : i32
    %c0_i32_0 = arith.constant 0 : i32
    %c0_i32_1 = arith.constant 0 : i32
    return %c0_i32, %c0_i32_0 : i32, i32
  }
  func.func @transform_3(%arg0: i32) -> (i32, i32) {
    %c0_i32 = arith.constant 0 : i32
    %c0_i32_0 = arith.constant 0 : i32
    %c0_i32_1 = arith.constant 0 : i32
    return %c0_i32, %c0_i32_0 : i32, i32
  }
  func.func @transform_4(%arg0: i32) -> (i32, i32) {
    %c0_i32 = arith.constant 0 : i32
    %c0_i32_0 = arith.constant 0 : i32
    %c0_i32_1 = arith.constant 0 : i32
    return %c0_i32, %c0_i32_0 : i32, i32
  }
  func.func @transform_5(%arg0: i32) -> (i32, i32) {
    %c0_i32 = arith.constant 0 : i32
    %c0_i32_0 = arith.constant 0 : i32
    %c0_i32_1 = arith.constant 0 : i32
    return %c0_i32, %c0_i32_0 : i32, i32
  }
  func.func @transform_6(%arg0: i32) -> (i32, i32) {
    %c0_i32 = arith.constant 0 : i32
    %c0_i32_0 = arith.constant 0 : i32
    %c0_i32_1 = arith.constant 0 : i32
    return %c0_i32, %c0_i32_0 : i32, i32
  }
  func.func @transform_7(%arg0: i32) -> (i32, i32) {
    %c0_i32 = arith.constant 0 : i32
    %c0_i32_0 = arith.constant 0 : i32
    %c0_i32_1 = arith.constant 0 : i32
    return %c0_i32, %c0_i32_0 : i32, i32
  }
  func.func @transform_8(%arg0: i32) -> (i32, i32) {
    %c0_i32 = arith.constant 0 : i32
    %c0_i32_0 = arith.constant 0 : i32
    %c0_i32_1 = arith.constant 0 : i32
    return %c0_i32, %c0_i32_0 : i32, i32
  }
  func.func @transform_9(%arg0: i32) -> (i32, i32) {
    %c0_i32 = arith.constant 0 : i32
    %c0_i32_0 = arith.constant 0 : i32
    %c0_i32_1 = arith.constant 0 : i32
    return %c0_i32, %c0_i32_0 : i32, i32
  }
  func.func @transform_10(%arg0: i32) -> (i32, i32) {
    %c0_i32 = arith.constant 0 : i32
    %c0_i32_0 = arith.constant 0 : i32
    %c0_i32_1 = arith.constant 0 : i32
    return %c0_i32, %c0_i32_0 : i32, i32
  }
  func.func @transform_11(%arg0: i32) -> (i32, i32) {
    %c0_i32 = arith.constant 0 : i32
    %c0_i32_0 = arith.constant 0 : i32
    %c0_i32_1 = arith.constant 0 : i32
    return %c0_i32, %c0_i32_0 : i32, i32
  }
  func.func @transform_12(%arg0: i32) -> (i32, i32) {
    %c0_i32 = arith.constant 0 : i32
    %c0_i32_0 = arith.constant 0 : i32
    %c0_i32_1 = arith.constant 0 : i32
    return %c0_i32, %c0_i32_0 : i32, i32
  }
  func.func @transform_13(%arg0: i32) -> (i32, i32) {
    %c0_i32 = arith.constant 0 : i32
    %c0_i32_0 = arith.constant 0 : i32
    %c0_i32_1 = arith.constant 0 : i32
    return %c0_i32, %c0_i32_0 : i32, i32
  }
  func.func @transform_14(%arg0: i32) -> (i32, i32) {
    %c0_i32 = arith.constant 0 : i32
    %c0_i32_0 = arith.constant 0 : i32
    %c0_i32_1 = arith.constant 0 : i32
    return %c0_i32, %c0_i32_0 : i32, i32
  }
  func.func @transform_15(%arg0: i32) -> (i32, i32) {
    %c0_i32 = arith.constant 0 : i32
    %c0_i32_0 = arith.constant 0 : i32
    %c0_i32_1 = arith.constant 0 : i32
    return %c0_i32, %c0_i32_0 : i32, i32
  }
  func.func @transform_16(%arg0: i32) -> (i32, i32) {
    %c0_i32 = arith.constant 0 : i32
    %c0_i32_0 = arith.constant 0 : i32
    %c0_i32_1 = arith.constant 0 : i32
    return %c0_i32, %c0_i32_0 : i32, i32
  }
}

</mosaic_0001>

<bundles_post_ra>
// kernel: _lambda_.1
= control target key start
LH: loop header
LB: loop body
LE: loop exit
PB: predicated region body
PF: predicated region fallthrough
CT: control target
= control target key end

     0   :  { %vm1538_vm0 = vcmask 1043456   ;;  %v793_v13 = vmov 839922192   ;;  %v794_v34 = vmov 0   ;;  %s799_s24 = smov 126   ;;  %s802_s25 = smov 127   ;;  %s1520_s0 = inlined_call_operand.vmem [shape: f32[4,512], index: 0, kind: input, shape index: {}]   ;;  %s1521_s5 = inlined_call_operand.vmem [shape: s32[36,1], index: 5, kind: input, shape index: {}]   ;;  %s1522_s4 = inlined_call_operand.vmem [shape: s32[36,1], index: 4, kind: input, shape index: {}]   ;;  %s1523_s10 = inlined_call_operand.vmem [shape: f32[4,1], index: 10, kind: input, shape index: {}]   ;;  %s1524_s11 = inlined_call_operand.vmem [shape: f32[4,1], index: 11, kind: input, shape index: {}]   ;;  %s1525_s12 = inlined_call_operand.vmem [shape: f32[8,1], index: 12, kind: input, shape index: {}]   ;;  %s1526_s14 = inlined_call_operand.vmem [shape: f32[8,1], index: 14, kind: input, shape index: {}]   ;;  %s1527_s2 = inlined_call_operand.vmem [shape: s32[1,384], index: 2, kind: input, shape index: {}]   ;;  %s1528_s3 = inlined_call_operand.vmem [shape: s32[1,384], index: 3, kind: input, shape index: {}]   ;;  %s1529_s1 = inlined_call_operand.vmem [shape: bf16[36,384], index: 1, kind: input, shape index: {}]   ;;  %s1530_s7 = inlined_call_operand.vmem [shape: bf16[4,256], index: 7, kind: input, shape index: {}]   ;;  %s1531_s8 = inlined_call_operand.vmem [shape: bf16[8,36], index: 8, kind: input, shape index: {}]   ;;  %s1532_s6 = inlined_call_operand.vmem [shape: f32[1,384], index: 6, kind: input, shape index: {}]   ;;  %s1533_s13 = inlined_call_operand.vmem [shape: f32[8,1], index: 13, kind: input, shape index: {}]   ;;  %s1534_s15 = inlined_call_operand.vmem [shape: f32[8,1], index: 15, kind: input, shape index: {}]   ;;  %s1535_s9 = inlined_call_operand.vmem [shape: bf16[8,76], index: 9, kind: input, shape index: {}]   ;;  %s1536_s16 = inlined_call_operand.vmem [shape: f32[8,256], index: 16, kind: output, shape index: {}]  }
   0x1   :  { %1540 = sst [smem:[#allocation2_spill]] %s1520_s0  ;;  %v82_v14 = vunpack.c.l.s4 %v793_v13  ;;  %787 = vset.pattern.permute.xlu2 %v794_v34  ;;  %v181_v35 = vld [vmem:[%s1521_s5 + $0x20] sm:$0xf]  ;;  %786 = vset.pattern.permute.xlu1 %v794_v34  ;;  %v141_v36 = vld [vmem:[%s1522_s4 + $0x18] sm:$0xff]  ;;  %v140_v56 = vld [vmem:[%s1522_s4 + $0x10] sm:$0xff] }
   0x2   :  { %s1541_s23 = sld [smem:[#allocation2_spill]]  ;;  %198 = vperm.xlu2 %787, %v181_v35   ;;  %788 = vset.pattern.permute.xlu0 %v794_v34  ;;  %v142_v37 = vld [vmem:[%s1522_s4 + $0x20] sm:$0xf]  ;;  %v180_v38 = vld [vmem:[%s1521_s5 + $0x18] sm:$0xff]  ;;  %v179_v58 = vld [vmem:[%s1521_s5 + $0x10] sm:$0xff] }
   0x3   :  { %v898_v15 = vunpack.c.0.s8 %v82_v14  ;;  %159 = vperm.xlu1 %786, %v142_v37   ;;  %v113_v48 = vld [vmem:[%s1523_s10] sm:$0xf]  ;;  %v139_v60 = vld [vmem:[%s1522_s4 + $0x8] sm:$0xff]  ;;  %v974_v14 = vld [vmem:[%s1529_s1 + $0x30] sm:$0x33]  ;;  %s800_s10 = smov 108  }
   0x4   :  { %v126_v51 = vld [vmem:[%s1524_s11] sm:$0xf] }
   0x5   :  { %v138_v57 = vld [vmem:[%s1522_s4] sm:$0xff] }
   0x6   :  { %v177_v59 = vld [vmem:[%s1521_s5] sm:$0xff] }
   0x7   :  { %v433_v61 = vld [vmem:[%s1525_s12] sm:$0xff] }
   0x8   :  { %v54_v0 = vld [vmem:[%s1541_s23] sm:$0xff]  ;;  %v55_v1 = vld [vmem:[%s1541_s23 + $0x8] sm:$0xff] }
   0x9   :  { %58 = vst [vmem:[#allocation1] ss:$2 sm:$0xff] %v54_v0 }
   0xa   :  { %60 = vst [vmem:[#allocation1 + $0x10] ss:$2 sm:$0xff] %v55_v1  ;;  %156 = vperm.xlu2 %787, %v141_v36  }
  0x10   :  { %v61_v2 = vld.sshfl [vmem:[#allocation1] sm:$0xff pattern:$0x75316420]  ;;  %v62_v3 = vld.sshfl [vmem:[#allocation1 + $0x8] sm:$0xff pattern:$0x75316420] }
  0x11   :  { %v63_v4 = vld.sshfl [vmem:[#allocation1 + $0x10] sm:$0xff pattern:$0x75316420]  ;;  %v64_v5 = vld.sshfl [vmem:[#allocation1 + $0x18] sm:$0xff pattern:$0x75316420] }
  0x12   :  { %v70_v6 = vsel %vm1538_vm0, %v61_v2, 0.0  ;;  %v71_v7 = vsel %vm1538_vm0, %v62_v3, 0.0  ;;  %v73_v8 = vsel %vm1538_vm0, %v63_v4, 0.0  ;;  %v75_v10 = vsel %vm1538_vm0, %v64_v5, 0.0  ;;  %195 = vperm.xlu2 %787, %v180_v38   ;;  %v137_v4 = vld [vmem:[%s1527_s2] sm:$0x7] }
  0x13   :  { %v72_v9 = vadd.f32 %v71_v7, %v70_v6  ;;  %v176_v5 = vld [vmem:[%s1528_s3] sm:$0x7]  ;;  %v959_v6 = vperm.slane %v137_v4, 0  ;;  %v961_v7 = vperm.slane %v137_v4, 2  ;;  %s797_s3 = smov 116  }
  0x14   :  { %v999_v35 = vperm.slane %v176_v5, 1 }
  0x15   :  { %v74_v11 = vadd.f32 %v73_v8, %v72_v9 }
  0x17   :  { %v76_v12 = vadd.f32 %v75_v10, %v74_v11  ;;  %v965_v10 = vperm.slane %v176_v5, 0  ;;  %v967_v11 = vperm.slane %v176_v5, 2  ;;  %v1088_v5 = vld [vmem:[%s1529_s1 + $0xc] sm:$0xff] }
  0x19   :  { %77 = vadd.xlane.f32.xlu0 %v76_v12 }
  0x5c   :  { %v949_v2 = vpop.permute.xlu2 %198 }
  0x64   :  { %v951_v3 = vpop.permute.xlu2 %156 }
  0x6c   :  { %v963_v9 = vpop.permute.xlu2 %195 }
  0x75   :  { %v160_v8 = vpop.permute.xlu1 %159 }
  0x76   :  { %v173_v12 = vadd.s32 %v160_v8, %v959_v6  ;;  %v175_v13 = vadd.s32 %v160_v8, %v961_v7 }
  0x78   :  { %vm227_vm4 = vcmp.ge.s32.totalorder %v173_v12, 0  ;;  %vm242_vm5 = vcmp.lt.s32.totalorder %v173_v12, 16  ;;  %vm229_vm6 = vcmp.ge.s32.totalorder %v175_v13, 0  ;;  %vm244_vm7 = vcmp.lt.s32.totalorder %v175_v13, 16  ;;  %v1098_v12 = vld [vmem:[%s1529_s1 + $0x8] sm:$0xf] }
  0x79   :  { %vm257_vm8 = vmand %vm227_vm4, %vm242_vm5  ;;  %v1103_v13 = vld [vmem:[%s1529_s1 + $0x14] sm:$0xf] }
  0x7a   :  { %vm259_vm10 = vmand %vm229_vm6, %vm244_vm7 }
  0x8c   :  { %v78_v16 = vpop.xlane.xlu0 %77 }
  0x8d   :  { %v79_v17 = vmul.f32 0.001953125, %v78_v16  ;;  %v329_v16 = vld [vmem:[%s1529_s1 + $0x38] sm:$0x3] }
  0x8f   :  { %v84_v18 = vperm.slane %v79_v17, %v898_v15 }
  0x91   :  { %v86_v19 = vsub.f32 %v54_v0, %v84_v18  ;;  %v87_v20 = vsub.f32 %v55_v1, %v84_v18  ;;  %v543_v0 = vld [vmem:[%s1526_s14] sm:$0xff]  ;;  %v178_v1 = vld [vmem:[%s1521_s5 + $0x8] sm:$0xff]  ;;  %v214_v18 = vadd.s32 %v949_v2, %v967_v11  ;;  %s796_s5 = smov 106   ;;  %s798_s14 = smov 117  }
  0x93   :  { %v88_v21 = vmul.f32 %v86_v19, %v86_v19  ;;  %v89_v22 = vmul.f32 %v87_v20, %v87_v20  ;;  %v560_v19 = vld [vmem:[%s1530_s7] sm:$0xf]  ;;  %v342_v20 = vunpack.c.l.bf16 %v974_v14  ;;  %vm274_vm11 = vcmp.ge.s32.totalorder %v214_v18, 0  ;;  %s801_s7 = smov 118  }
  0x94   :  { %vm304_vm14 = vcmp.lt.s32.totalorder %v214_v18, 16  ;;  %vm289_vm15 = vmand %vm259_vm10, %vm274_vm11 }
  0x95   :  { %92 = vst [vmem:[#allocation1] ss:$2 sm:$0xff] %v88_v21  ;;  %v344_v21 = vunpack.c.l.bf16 %v329_v16 }
  0x96   :  { %94 = vst [vmem:[#allocation1 + $0x10] ss:$2 sm:$0xff] %v89_v22  ;;  %v561_v22 = vunpack.c.l.bf16 %v560_v19 }
  0x9c   :  { %v95_v23 = vld.sshfl [vmem:[#allocation1] sm:$0xff pattern:$0x75316420]  ;;  %v96_v24 = vld.sshfl [vmem:[#allocation1 + $0x8] sm:$0xff pattern:$0x75316420] }
  0x9d   :  { %v97_v25 = vld.sshfl [vmem:[#allocation1 + $0x10] sm:$0xff pattern:$0x75316420]  ;;  %v103_v26 = vsel %vm1538_vm0, %v95_v23, 0.0  ;;  %v104_v27 = vsel %vm1538_vm0, %v96_v24, 0.0 }
  0x9e   :  { %v98_v28 = vld.sshfl [vmem:[#allocation1 + $0x18] sm:$0xff pattern:$0x75316420]  ;;  %v105_v29 = vadd.f32 %v104_v27, %v103_v26  ;;  %v106_v30 = vsel %vm1538_vm0, %v97_v25, 0.0 }
  0x9f   :  { %v108_v32 = vsel %vm1538_vm0, %v98_v28, 0.0 }
  0xa0   :  { %v107_v31 = vadd.f32 %v106_v30, %v105_v29 }
  0xa2   :  { %v109_v33 = vadd.f32 %v108_v32, %v107_v31 }
  0xa4   :  { %110 = vadd.xlane.f32.xlu0 %v109_v33 }
 0x117   :  { %v111_v39 = vpop.xlane.xlu0 %110 }
 0x118   :  { %v112_v40 = vmul.f32 0.001953125, %v111_v39 }
 0x11a   :  { %v114_v41 = vadd.f32 1e-05, %v112_v40 }
 0x11c   :  { %789 = vrsqrt.f32 %v114_v41  ;;  %vm121_vm2 = vweird.f32 %v114_v41 }
 0x122   :  { %v790_v42 = vpop.eup %789 }
 0x123   :  { %v116_v43 = vmul.f32 %v790_v42, %v114_v41  ;;  %vm122_vm1 = vweird.f32 %v790_v42  ;;  %v1003_v41 = vperm.slane %v137_v4, 1 }
 0x124   :  { %vm123_vm3 = vmor %vm121_vm2, %vm122_vm1 }
 0x125   :  { %v117_v44 = vmul.f32 %v790_v42, %v116_v43  ;;  %vm319_vm2 = vmand %vm289_vm15, %vm304_vm14 }
 0x127   :  { %v118_v45 = vmul.f32 0.5, %v117_v44 }
 0x129   :  { %v119_v46 = vsub.f32 1.5, %v118_v45  ;;  %v1009_v45 = vadd.s32 %v949_v2, %v999_v35 }
 0x12b   :  { %v120_v47 = vmul.f32 %v790_v42, %v119_v46  ;;  %v170_v46 = vadd.s32 %v951_v3, %v959_v6  ;;  %vm273_vm4 = vcmp.ge.s32.totalorder %v1009_v45, 0 }
 0x12d   :  { %v124_v49 = vsel %vm123_vm3, %v790_v42, %v120_v47  ;;  %vm1539_vm3 = vcmask 1041408   ;;  %v1015_v47 = vadd.s32 %v951_v3, %v1003_v41  ;;  %vm224_vm5 = vcmp.ge.s32.totalorder %v170_v46, 0 }
 0x12e   :  { %v125_v50 = vmul.f32 %v124_v49, %v113_v48  ;;  %v172_v48 = vadd.s32 %v951_v3, %v961_v7  ;;  %v174_v49 = vadd.s32 %v160_v8, %v1003_v41 }
 0x12f   :  { %vm225_vm6 = vcmp.ge.s32.totalorder %v1015_v47, 0 }
 0x130   :  { %351 = vperm.xlu1 %786, %v125_v50   ;;  %v130_v52 = vrot.slane %v125_v50, 4  ;;  %v127_v53 = vmul.f32 %v125_v50, %v79_v17  ;;  %v212_v17 = vadd.s32 %v949_v2, %v965_v10  ;;  %vm226_vm7 = vcmp.ge.s32.totalorder %v172_v48, 0 }
 0x131   :  { %vm241_vm10 = vcmp.lt.s32.totalorder %v172_v48, 16  ;;  %vm228_vm11 = vcmp.ge.s32.totalorder %v174_v49, 0 }
 0x132   :  { %v132_v54 = vsel %vm1538_vm0, %v125_v50, %v130_v52  ;;  %v128_v55 = vsub.f32 %v126_v51, %v127_v53  ;;  %vm272_vm9 = vcmp.ge.s32.totalorder %v212_v17, 0  ;;  %vm302_vm13 = vcmp.lt.s32.totalorder %v212_v17, 16  ;;  %v1035_v53 = vld [vmem:[%s1529_s1 + $0x18] sm:$0xff] }
 0x133   :  { %347 = vperm.xlu0 %788, %v132_v54   ;;  %vm287_vm12 = vmand %vm257_vm8, %vm272_vm9  ;;  %v1023_v50 = vadd.s32 %v963_v9, %v965_v10  ;;  %vm239_vm8 = vcmp.lt.s32.totalorder %v170_v46, 16  ;;  %v1028_v51 = vadd.s32 %v963_v9, %v967_v11  ;;  %v1040_v54 = vld [vmem:[%s1529_s1 + $0x24] sm:$0xff]  ;;  %vm240_vm9 = vcmp.lt.s32.totalorder %v1015_v47, 16 }
 0x134   :  { %375 = vperm.xlu2 %787, %v128_v55   ;;  %v134_v62 = vrot.slane %v128_v55, 4  ;;  %vm317_vm1 = vmand %vm287_vm12, %vm302_vm13  ;;  %vm243_vm12 = vcmp.lt.s32.totalorder %v174_v49, 16 }
 0x135   :  { %vm1067_vm13 = vmand %vm224_vm5, %vm239_vm8  ;;  %vm269_vm14 = vcmp.ge.s32.totalorder %v1023_v50, 0  ;;  %vm271_vm5 = vcmp.ge.s32.totalorder %v1028_v51, 0 }
 0x136   :  { %v136_v63 = vsel %vm1538_vm0, %v128_v55, %v134_v62  ;;  %v1045_v55 = vadd.s32 %v963_v9, %v999_v35  ;;  %vm1121_vm15 = vmand %vm1067_vm13, %vm269_vm14  ;;  %v492_v62 = vld [vmem:[%s1532_s6] sm:$0x7] }
 0x138   :  { %153 = vperm.xlu1 %786, %v140_v56   ;;  %v1050_v56 = vld [vmem:[%s1529_s1 + $0x20] sm:$0xf] }
 0x139   :  { %v338_v3 = vunpack.c.l.bf16 %v1050_v56 }
 0x13c   :  { %147 = vperm.xlu2 %787, %v138_v57   ;;  %v1055_v57 = vld [vmem:[%s1529_s1 + $0x2c] sm:$0xf] }
 0x13d   :  { %v341_v4 = vunpack.c.l.bf16 %v1055_v57 }
 0x140   :  { %192 = vperm.xlu1 %786, %v179_v58  }
 0x144   :  { %186 = vperm.xlu2 %787, %v177_v59   ;;  %v343_v59 = vunpack.c.h.bf16 %v974_v14 }
 0x148   :  { %150 = vperm.xlu1 %786, %v139_v60   ;;  %v1062_v60 = vld [vmem:[%s1529_s1] sm:$0xff] }
 0x149   :  { %v330_v9 = vunpack.c.l.bf16 %v1062_v60 }
 0x14c   :  { %436 = vperm.xlu2 %787, %v433_v61  }
 0x150   :  { %371 = vperm.xlu1 %786, %v136_v63   ;;  %v336_v63 = vunpack.c.l.bf16 %v1035_v53 }
 0x154   :  { %546 = vperm.xlu2 %787, %v543_v0   ;;  %v339_v0 = vunpack.c.l.bf16 %v1040_v54 }
 0x158   :  { %189 = vperm.xlu1 %786, %v178_v1  }
 0x18e   :  { %v987_v23 = vpop.permute.xlu2 %375 }
 0x18f   :  { %v571_v28 = vperm.slane %v987_v23, %v898_v15 }
 0x196   :  { %v148_v42 = vpop.permute.xlu2 %147 }
 0x197   :  { %v161_v58 = vadd.s32 %v148_v42, %v959_v6  ;;  %v163_v61 = vadd.s32 %v148_v42, %v961_v7 }
 0x199   :  { %vm215_vm0 = vcmp.ge.s32.totalorder %v161_v58, 0 }
 0x19e   :  { %v187_v1 = vpop.permute.xlu2 %186 }
 0x19f   :  { %v1091_v8 = vadd.s32 %v187_v1, %v965_v10  ;;  %v1113_v16 = vadd.s32 %v187_v1, %v967_v11 }
 0x1a2   :  { %v989_v24 = vpop.permute.xlu1 %351 }
 0x1a3   :  { %v366_v25 = vmul.f32 %v989_v24, %v342_v20  ;;  %v368_v26 = vmul.f32 %v989_v24, %v344_v21  ;;  %v565_v27 = vperm.slane %v989_v24, %v898_v15  ;;  %v333_v21 = vunpack.c.l.bf16 %v1088_v5 }
 0x1a5   :  { %v567_v29 = vmul.f32 %v565_v27, %v561_v22  ;;  %v390_v30 = vadd.f32 %v987_v23, %v366_v25  ;;  %v392_v31 = vadd.f32 %v987_v23, %v368_v26  ;;  %v162_v22 = vadd.s32 %v148_v42, %v1003_v41 }
 0x1a6   :  { %v332_v27 = vunpack.c.l.bf16 %v1098_v12 }
 0x1a7   :  { %v573_v32 = vadd.f32 %v571_v28, %v567_v29  ;;  %v405_v33 = vmax.f32 %v390_v30, 0.0  ;;  %v407_v34 = vmax.f32 %v392_v31, 0.0  ;;  %v335_v28 = vunpack.c.l.bf16 %v1103_v13 }
 0x1a8   :  { %v367_v30 = vmul.f32 %v989_v24, %v343_v59  ;;  %v340_v24 = vunpack.c.h.bf16 %v1040_v54 }
 0x1a9   :  { %v574_v36 = vmax.f32 %v573_v32, 0.0  ;;  %v420_v37 = vsel %vm317_vm1, %v405_v33, 0.0  ;;  %v422_v38 = vsel %vm319_vm2, %v407_v34, 0.0  ;;  %vm299_vm1 = vcmp.lt.s32.totalorder %v1023_v50, 16  ;;  %vm1078_vm2 = vmand %vm226_vm7, %vm241_vm10 }
 0x1aa   :  { %v1001_v39 = vpop.permute.xlu1 %153  ;;  %v430_v15 = vpack.c.bf16 %v420_v37, %v420_v37  ;;  %v432_v40 = vpack.c.bf16 %v422_v38, %v422_v38  ;;  %vm1107_vm7 = vmand %vm228_vm11, %vm243_vm12  ;;  %vm217_vm11 = vcmp.ge.s32.totalorder %v163_v61, 0  ;;  %vm232_vm12 = vcmp.lt.s32.totalorder %v163_v61, 16  ;;  %v522_v38 = vld [vmem:[%s1533_s13] sm:$0xff]  ;;  %s795_s13 = smov 107  }
 0x1ab   :  { %576 = vst [vmem:[#allocation1] ss:$2 sm:$0xff] %v574_v36  ;;  %v167_v17 = vadd.s32 %v1001_v39, %v959_v6  ;;  %vm1131_vm10 = vmand %vm1078_vm2, %vm271_vm5  ;;  %v169_v25 = vadd.s32 %v1001_v39, %v961_v7  ;;  %vm260_vm2 = vcmp.ge.s32.totalorder %v1091_v8, 0  ;;  %v337_v33 = vunpack.c.h.bf16 %v1035_v53  ;;  %v1170_v36 = vpop.permute.xlu0 %347 }
 0x1ac   :  { %v445_v43 = vsel %vm1539_vm3, %v430_v15, 0  ;;  %v451_v44 = vsel %vm1539_vm3, %v432_v40, 0  ;;  %vm230_vm3 = vcmp.lt.s32.totalorder %v161_v58, 16  ;;  %vm1147_vm13 = vmand %vm1107_vm7, %vm273_vm4  ;;  %v168_v37 = vadd.s32 %v1001_v39, %v1003_v41 }
 0x1ad   :  { %458 = vmatpush.bf16.msra.mxu1 %v445_v43  ;;  %484 = vmatpush.bf16.msra.mxu2 %v451_v44  ;;  %vm1156_vm14 = vmand %vm215_vm0, %vm230_vm3  ;;  %vm236_vm4 = vcmp.lt.s32.totalorder %v167_v17, 16  ;;  %v331_v40 = vunpack.c.h.bf16 %v1062_v60  ;;  %v334_v39 = vunpack.c.h.bf16 %v1088_v5  ;;  %vm238_vm5 = vcmp.lt.s32.totalorder %v169_v25, 16 }
 0x1ae   :  { %vm1164_vm7 = vmand %vm217_vm11, %vm232_vm12  ;;  %v1201_v43 = vadd.s32 %v187_v1, %v999_v35  ;;  %vm1565_vm12 = vcmp.lt.s32.totalorder %v1028_v51, 16  ;;  %v391_v47 = vadd.f32 %v987_v23, %v367_v30  ;;  %v360_v50 = vmul.f32 %v1170_v36, %v336_v63 }
 0x1af   :  { %vm1178_vm3 = vmand %vm1121_vm15, %vm299_vm1  ;;  %v363_v51 = vmul.f32 %v1170_v36, %v339_v0  ;;  %v365_v58 = vmul.f32 %v1170_v36, %v341_v4  ;;  %v354_v57 = vmul.f32 %v1170_v36, %v330_v9  ;;  %v357_v61 = vmul.f32 %v1170_v36, %v333_v21 }
 0x1b0   :  { %vm1186_vm11 = vmand %vm225_vm6, %vm240_vm9  ;;  %vm1564_vm6 = vcmp.ge.s32.totalorder %v167_v17, 0  ;;  %v406_v14 = vmax.f32 %v391_v47, 0.0  ;;  %v359_v12 = vmul.f32 %v1170_v36, %v335_v28  ;;  %v358_v49 = vmul.f32 %v1170_v36, %v334_v39 }
 0x1b1   :  { %vm1196_vm15 = vmand %vm1156_vm14, %vm260_vm2  ;;  %vm1568_vm2 = vcmp.ge.s32.totalorder %v1113_v16, 0 }
 0x1b2   :  { %v1030_v52 = vpop.permute.xlu1 %192  ;;  %vm251_vm9 = vmand %vm1564_vm6, %vm236_vm4 }
 0x1b3   :  { %v206_v19 = vadd.s32 %v1030_v52, %v965_v10  ;;  %v208_v31 = vadd.s32 %v1030_v52, %v967_v11  ;;  %vm1209_vm0 = vmand %vm1131_vm10, %vm1565_vm12  ;;  %v1225_v48 = vadd.s32 %v1030_v52, %v999_v35  ;;  %v362_v52 = vmul.f32 %v1170_v36, %v338_v3 }
 0x1b4   :  { %vm1218_vm8 = vmand %vm1164_vm7, %vm1568_vm2  ;;  %vm1574_vm7 = vcmp.lt.s32.totalorder %v1009_v45, 16  ;;  %vm1578_vm12 = vcmp.ge.s32.totalorder %v1045_v55, 0 }
 0x1b5   :  { %vm268_vm1 = vcmp.ge.s32.totalorder %v208_v31, 0  ;;  %vm1571_vm10 = vcmp.ge.s32.totalorder %v206_v19, 0  ;;  %vm1242_vm6 = vmand %vm1147_vm13, %vm1574_vm7  ;;  %vm1587_vm7 = vcmp.lt.s32.totalorder %v206_v19, 16 }
 0x1b6   :  { %vm1228_vm4 = vmand %vm251_vm9, %vm1571_vm10  ;;  %vm1577_vm10 = vcmp.ge.s32.totalorder %v169_v25, 0  ;;  %vm1584_vm9 = vcmp.ge.s32.totalorder %v162_v22, 0  ;;  %v421_v53 = vsel %vm1242_vm6, %v406_v14, 0.0 }
 0x1b7   :  { %vm253_vm14 = vmand %vm1577_vm10, %vm238_vm5  ;;  %vm298_vm10 = vcmp.lt.s32.totalorder %v208_v31, 16  ;;  %v431_v15 = vpack.c.bf16 %v421_v53, %v421_v53 }
 0x1b8   :  { %vm1258_vm13 = vmand %vm1186_vm11, %vm1578_vm12  ;;  %vm1583_vm12 = vcmp.lt.s32.totalorder %v162_v22, 16  ;;  %v356_v22 = vmul.f32 %v1170_v36, %v332_v27  ;;  %vm1599_vm11 = vcmp.lt.s32.totalorder %v1091_v8, 16  ;;  %v364_v27 = vmul.f32 %v1170_v36, %v340_v24 }
 0x1b9   :  { %vm1266_vm5 = vmand %vm253_vm14, %vm268_vm1  ;;  %vm1590_vm14 = vcmp.lt.s32.totalorder %v168_v37, 16 }
 0x1ba   :  { %v1139_v26 = vpop.permute.xlu1 %150  ;;  %vm1277_vm2 = vmand %vm1584_vm9, %vm1583_vm12 }
 0x1bb   :  { %vm1284_vm1 = vmand %vm1228_vm4, %vm1587_vm7  ;;  %v164_v4 = vadd.s32 %v1139_v26, %v959_v6  ;;  %v166_v9 = vadd.s32 %v1139_v26, %v961_v7  ;;  %vm1591_vm4 = vcmp.ge.s32.totalorder %v168_v37, 0  ;;  %vm267_vm7 = vcmp.ge.s32.totalorder %v1225_v48, 0 }
 0x1bc   :  { %vm1298_vm9 = vmand %vm1591_vm4, %vm1590_vm14  ;;  %v165_v21 = vadd.s32 %v1139_v26, %v1003_v41  ;;  %v361_v26 = vmul.f32 %v1170_v36, %v337_v33 }
 0x1bd   :  { %vm1306_vm12 = vmand %vm1266_vm5, %vm298_vm10  ;;  %vm233_vm14 = vcmp.lt.s32.totalorder %v164_v4, 16 }
 0x1be   :  { %vm1327_vm10 = vmand %vm1298_vm9, %vm267_vm7  ;;  %vm235_vm9 = vcmp.lt.s32.totalorder %v166_v9, 16  ;;  %vm234_vm4 = vcmp.lt.s32.totalorder %v165_v21, 16 }
 0x1bf   :  { %vm767_vm5 = vmpackc.low %vm1209_vm0, %vm1306_vm12  ;;  %vm219_vm12 = vcmp.ge.s32.totalorder %v165_v21, 0 }
 0x1c0   :  { %vm1598_vm7 = vmpackc.low %vm1178_vm3, %vm1284_vm1  ;;  %vm1602_vm3 = vcmp.lt.s32.totalorder %v1113_v16, 16 }
 0x1c1   :  { %vm1350_vm0 = vmand %vm1196_vm15, %vm1599_vm11  ;;  %vm1605_vm15 = vcmp.lt.s32.totalorder %v1225_v48, 16 }
 0x1c2   :  { %v1263_v59 = vpop.permute.xlu1 %371  ;;  %vm1363_vm1 = vmand %vm1218_vm8, %vm1602_vm3  ;;  %vm1608_vm8 = vcmp.ge.s32.totalorder %v164_v4, 0  ;;  %v1445_v4 = vperm.slane %v492_v62, 2 }
 0x1c3   :  { %v384_v0 = vadd.f32 %v1263_v59, %v360_v50  ;;  %v387_v1 = vadd.f32 %v1263_v59, %v363_v51  ;;  %v386_v2 = vadd.f32 %v1263_v59, %v362_v52  ;;  %v389_v3 = vadd.f32 %v1263_v59, %v365_v58  ;;  %vm1373_vm6 = vmand %vm1327_vm10, %vm1605_vm15 }
 0x1c4   :  { %v378_v30 = vadd.f32 %v1263_v59, %v354_v57  ;;  %v381_v31 = vadd.f32 %v1263_v59, %v357_v61  ;;  %v380_v32 = vadd.f32 %v1263_v59, %v356_v22  ;;  %v383_v33 = vadd.f32 %v1263_v59, %v359_v12  ;;  %vm248_vm11 = vmand %vm1608_vm8, %vm233_vm14 }
 0x1c5   :  { %v399_v18 = vmax.f32 %v384_v0, 0.0  ;;  %v402_v19 = vmax.f32 %v387_v1, 0.0  ;;  %v401_v6 = vmax.f32 %v386_v2, 0.0  ;;  %v404_v7 = vmax.f32 %v389_v3, 0.0  ;;  %vm1400_vm15 = vmand %vm219_vm12, %vm234_vm4 }
 0x1c6   :  { %v393_v24 = vmax.f32 %v378_v30, 0.0  ;;  %v396_v37 = vmax.f32 %v381_v31, 0.0  ;;  %vm1612_vm10 = vcmp.lt.s32.totalorder %v1045_v55, 16  ;;  %v388_v42 = vadd.f32 %v1263_v59, %v364_v27 }
 0x1c7   :  { %v754_v25 = vpack.c.bf16 %v402_v19, %v399_v18  ;;  %v768_v29 = vpack.c.bf16 %v404_v7, %v401_v6  ;;  %vm1391_vm3 = vmand %vm1258_vm13, %vm1612_vm10  ;;  %vm1617_vm8 = vcmp.ge.s32.totalorder %v1201_v43, 0  ;;  %v395_v47 = vmax.f32 %v380_v32, 0.0 }
 0x1c8   :  { %vm1408_vm13 = vmand %vm1277_vm2, %vm1617_vm8  ;;  %v398_v48 = vmax.f32 %v383_v33, 0.0  ;;  %v757_v50 = vpack.c.bf16 %v396_v37, %v393_v24  ;;  %v403_v23 = vmax.f32 %v388_v42, 0.0  ;;  %v494_v0 = vperm.slane %v492_v62, 0 }
 0x1c9   :  { %755 = vmatpush.bf16.msk.msra.mxu1 %vm1598_vm7, %v754_v25  ;;  %769 = vmatpush.bf16.msk.msra.mxu2 %vm767_vm5, %v768_v29  ;;  %vm1609_vm5 = vcmp.ge.s32.totalorder %v166_v9, 0  ;;  %v495_v1 = vperm.slane %v492_v62, 1  ;;  %v577_v62 = vld.sshfl [vmem:[#allocation1] sm:$0xff pattern:$0x75316420] }
 0x1ca   :  { %v190_v28 = vpop.permute.xlu1 %189  ;;  %vm1383_vm7 = vmand %vm1609_vm5, %vm235_vm9  ;;  %v771_v39 = vpack.c.bf16 %v398_v48, %v395_v47 }
 0x1cb   :  { %v203_v16 = vadd.s32 %v190_v28, %v965_v10  ;;  %v205_v34 = vadd.s32 %v190_v28, %v967_v11  ;;  %v385_v11 = vadd.f32 %v1263_v59, %v361_v26  ;;  %v204_v44 = vadd.s32 %v190_v28, %v999_v35 }
 0x1cc   :  { %v355_v35 = vmul.f32 %v1170_v36, %v331_v40  ;;  %v382_v40 = vadd.f32 %v1263_v59, %v358_v49  ;;  %v423_v36 = vld [vmem:[%s1531_s8] sm:$0xf] }
 0x1cd   :  { %vm263_vm14 = vcmp.ge.s32.totalorder %v203_v16, 0  ;;  %vm293_vm9 = vcmp.lt.s32.totalorder %v203_v16, 16  ;;  %vm265_vm10 = vcmp.ge.s32.totalorder %v205_v34, 0  ;;  %vm295_vm12 = vcmp.lt.s32.totalorder %v205_v34, 16 }
 0x1ce   :  { %vm278_vm5 = vmand %vm248_vm11, %vm263_vm14  ;;  %v400_v51 = vmax.f32 %v385_v11, 0.0  ;;  %v379_v60 = vadd.f32 %v1263_v59, %v355_v35  ;;  %vm1620_vm14 = vcmask 1041408   ;;  %vm264_vm8 = vcmp.ge.s32.totalorder %v204_v44, 0 }
 0x1cf   :  { %vm308_vm4 = vmand %vm278_vm5, %vm293_vm9  ;;  %v448_v5 = vsel %vm1620_vm14, %v431_v15, 0  ;;  %vm439_vm9 = vcmask 293888   ;;  %v397_v45 = vmax.f32 %v382_v40, 0.0  ;;  %vm716_vm14 = vcmask 1045504  }
 0x1d0   :  { %vm756_vm2 = vmpackc.low %vm308_vm4, %vm1350_vm0  ;;  %vm294_vm4 = vcmp.lt.s32.totalorder %v204_v44, 16  ;;  %v761_v52 = vpack.c.bf16 %v403_v23, %v400_v51  ;;  %v394_v58 = vmax.f32 %v379_v60, 0.0 }
 0x1d1   :  { %758 = vmatpush.bf16.msk.msra.mxu1 %vm756_vm2, %v757_v50  ;;  %vm280_vm11 = vmand %vm1383_vm7, %vm265_vm10 }
 0x1d2   :  { %vm310_vm5 = vmand %vm280_vm11, %vm295_vm12  ;;  %vm291_vm12 = vcmp.lt.s32.totalorder %v1201_v43, 16  ;;  %v764_v59 = vpack.c.bf16 %v397_v45, %v394_v58  ;;  %v437_v43 = vpop.permute.xlu2 %436 }
 0x1d3   :  { %vm770_vm0 = vmpackc.low %vm310_vm5, %vm1363_vm1  ;;  %vm641_vm5 = vcmask 883712  }
 0x1d4   :  { %772 = vmatpush.bf16.msk.msra.mxu2 %vm770_vm0, %v771_v39  ;;  %759 = vmatmul.msk.bf16.vlgmr.msra.gmra.mxu1 %vm439_vm9, %v423_v36  ;;  %vm279_vm7 = vmand %vm1400_vm15, %vm264_vm8  ;;  %vm650_vm8 = vcmask 875520  }
 0x1d5   :  { %471 = vmatpush.bf16.msrb.mxu1 %v448_v5  ;;  %vm760_vm10 = vmpackc.low %vm1391_vm3, %vm1373_vm6 }
 0x1d6   :  { %vm309_vm2 = vmand %vm279_vm7, %vm294_vm4  ;;  %vm623_vm7 = vcmask 957440  }
 0x1d7   :  { %773 = vmatmul.msk.bf16.vlgmr.msra.gmra.mxu2 %vm439_vm9, %v423_v36  ;;  %vm306_vm1 = vmand %vm1408_vm13, %vm291_vm12  ;;  %vm659_vm13 = vcmask 867328  }
 0x1d8   :  { %vm763_vm11 = vmpackc.low %vm309_vm2, %vm306_vm1  ;;  %vm605_vm1 = vcmask 1031168  }
 0x1d9   :  { %762 = vmatpush.bf16.msk.msrb.mxu1 %vm760_vm10, %v761_v52  ;;  %vm632_vm10 = vcmask 949248  }
 0x1da   :  { %v547_v42 = vpop.permute.xlu2 %546 }
 0x1dd   :  { %765 = vmatpush.bf16.msk.msrb.mxu1 %vm763_vm11, %v764_v59  ;;  %vm614_vm11 = vcmask 965632  }
 0x1e4   :  { %766 = vmatmul.msk.bf16.vlgmr.msrb.gmra.mxu1 %vm439_vm9, %v423_v36  ;;  %vm1621_vm9 = vcmask 1043456  }
 0x1e5   :  { %vm1622_vm0 = vmmov %vm1621_vm9 }
 0x1e6   :  { %vm1623_vm4 = vmmov %vm1622_vm0 }
 0x1e7   :  { %vm1624_vm12 = vmmov %vm1622_vm0 }
 0x1e8   :  { %vm1625_vm2 = vmmov %vm1622_vm0 }
 0x251   :  { %v462_v56 = vpop.f32.mrf.mxu1 }
 0x252   :  { %v463_v63 = vadd.f32 %v462_v56, %v437_v43 }
 0x254   :  { %v500_v17 = vmul.f32 %v494_v0, %v463_v63 }
 0x259   :  { %v464_v57 = vpop.f32.mrf.mxu1 }
 0x25a   :  { %v488_v61 = vpop.f32.mrf.mxu2 }
 0x25b   :  { %v489_v3 = vadd.f32 %v488_v61, %v437_v43  ;;  %v706_v61 = vld [vmem:[%s1534_s15] sm:$0xff] }
 0x25d   :  { %v502_v19 = vmul.f32 %v1445_v4, %v489_v3 }
 0x261   :  { %v475_v2 = vpop.f32.mrf.mxu1 }
 0x262   :  { %v476_v9 = vadd.f32 %v475_v2, %v437_v43  ;;  %v490_v14 = vpop.f32.mrf.mxu2  ;;  %v578_v43 = vld.sshfl [vmem:[#allocation1 + $0x8] sm:$0xff pattern:$0x75316420] }
 0x264   :  { %v501_v18 = vmul.f32 %v495_v1, %v476_v9 }
 0x266   :  { %v503_v20 = vadd.f32 %v501_v18, %v500_v17 }
 0x268   :  { %v504_v6 = vadd.f32 %v503_v20, %v502_v19 }
 0x269   :  { %v477_v7 = vpop.f32.mrf.mxu1 }
 0x26a   :  { %505 = vadd.xlane.f32.xlu0 %v504_v6 }
 0x2dd   :  { %v506_v21 = vpop.xlane.xlu0 %505 }
 0x2de   :  { %v507_v22 = vmul.f32 0.0078125, %v506_v21 }
 0x2e0   :  { %v508_v25 = vsub.f32 %v463_v63, %v507_v22  ;;  %v509_v29 = vsub.f32 %v476_v9, %v507_v22  ;;  %v510_v30 = vsub.f32 %v489_v3, %v507_v22 }
 0x2e2   :  { %v511_v31 = vmul.f32 %v508_v25, %v494_v0  ;;  %v512_v41 = vmul.f32 %v509_v29, %v495_v1  ;;  %v513_v12 = vmul.f32 %v510_v30, %v1445_v4 }
 0x2e4   :  { %v514_v26 = vmul.f32 %v511_v31, %v511_v31  ;;  %v515_v13 = vmul.f32 %v512_v41, %v512_v41  ;;  %v516_v53 = vmul.f32 %v513_v12, %v513_v12 }
 0x2e6   :  { %v517_v27 = vadd.f32 %v515_v13, %v514_v26 }
 0x2e8   :  { %v518_v28 = vadd.f32 %v517_v27, %v516_v53 }
 0x2ea   :  { %519 = vadd.xlane.f32.xlu1 %v518_v28 }
 0x35d   :  { %v520_v8 = vpop.xlane.xlu1 %519 }
 0x35e   :  { %v521_v32 = vmul.f32 0.0078125, %v520_v8 }
 0x360   :  { %v523_v33 = vadd.f32 1e-05, %v521_v32 }
 0x362   :  { %791 = vrsqrt.f32 %v523_v33  ;;  %vm530_vm3 = vweird.f32 %v523_v33 }
 0x368   :  { %v792_v54 = vpop.eup %791 }
 0x369   :  { %v525_v16 = vmul.f32 %v792_v54, %v523_v33  ;;  %vm531_vm6 = vweird.f32 %v792_v54 }
 0x36a   :  { %vm532_vm15 = vmor %vm530_vm3, %vm531_vm6  ;;  %vm596_vm6 = vcmask 1039360  }
 0x36b   :  { %v526_v34 = vmul.f32 %v792_v54, %v525_v16  ;;  %vm1626_vm3 = vmmov %vm1622_vm0 }
 0x36d   :  { %v527_v24 = vmul.f32 0.5, %v526_v34 }
 0x36f   :  { %v528_v37 = vsub.f32 1.5, %v527_v24 }
 0x371   :  { %v529_v15 = vmul.f32 %v792_v54, %v528_v37 }
 0x373   :  { %v533_v10 = vsel %vm532_vm15, %v792_v54, %v529_v15  ;;  %vm1627_vm15 = vmmov %vm1622_vm0 }
 0x374   :  { %v534_v11 = vmul.f32 %v533_v10, %v522_v38 }
 0x376   :  { %537 = vperm.xlu2 %787, %v534_v11  }
 0x3d0   :  { %v538_v44 = vpop.permute.xlu2 %537 }
 0x3d1   :  { %v540_v46 = vmul.f32 %v538_v44, %v511_v31  ;;  %v541_v55 = vmul.f32 %v538_v44, %v512_v41  ;;  %v542_v48 = vmul.f32 %v538_v44, %v513_v12 }
 0x3d3   :  { %v549_v35 = vadd.f32 %v547_v42, %v540_v46  ;;  %v550_v47 = vadd.f32 %v547_v42, %v541_v55  ;;  %v551_v60 = vadd.f32 %v547_v42, %v542_v48  ;;  %v705_v48 = vld [vmem:[%s1535_s9] sm:$0xf] }
 0x3d5   :  { %v552_v49 = vmax.f32 %v549_v35, 0.0  ;;  %v553_v50 = vmax.f32 %v550_v47, 0.0  ;;  %v554_v39 = vmax.f32 %v551_v60, 0.0 }
 0x3d7   :  { %v555_v51 = vmul.f32 %v552_v49, %v494_v0  ;;  %v556_v23 = vmul.f32 %v553_v50, %v495_v1  ;;  %v557_v45 = vmul.f32 %v554_v39, %v1445_v4  ;;  %v581_v0 = vpack.c.bf16 %v578_v43, %v577_v62 }
 0x3d9   :  { %v558_v40 = vpack.c.bf16 %v556_v23, %v555_v51  ;;  %v559_v59 = vpack.c.bf16 %v557_v45, %v557_v45  ;;  %v663_v1 = vunpack.c.l.b16 %v581_v0  ;;  %v664_v22 = vunpack.c.h.b16 %v581_v0 }
 0x3db   :  { %v583_v5 = vunpack.c.l.b16 %v558_v40  ;;  %v584_v36 = vunpack.c.h.b16 %v558_v40  ;;  %v588_v56 = vunpack.c.l.b16 %v559_v59  ;;  %v665_v3 = vpack.c.b16 %v663_v1, %v663_v1 }
 0x3dc   :  { %v666_v30 = vpack.c.b16 %v664_v22, %v664_v22 }
 0x3dd   :  { %v1452_v52 = vpack.c.b16 %v583_v5, %v583_v5  ;;  %v1454_v58 = vpack.c.b16 %v584_v36, %v584_v36  ;;  %v589_v57 = vpack.c.b16 %v588_v56, %v588_v56 }
 0x3df   :  { %646 = vrot.lane.b32.xlu1 %v1454_v58, %s795_s13  ;;  %644 = vrot.lane.b32.xlu0 %v1452_v52, %s795_s13 }
 0x3e0   :  { %653 = vrot.lane.b32.xlu2 %v1452_v52, %s796_s5 }
 0x3e7   :  { %628 = vrot.lane.b32.xlu1 %v1454_v58, %s797_s3  ;;  %619 = vrot.lane.b32.xlu0 %v1454_v58, %s798_s14 }
 0x3e8   :  { %655 = vrot.lane.b32.xlu2 %v1454_v58, %s796_s5 }
 0x3ef   :  { %599 = vrot.lane.b32.xlu1 %v1452_v52, %s799_s24  ;;  %639 = vrot.lane.b32.xlu0 %v589_v57, %s800_s10 }
 0x3f0   :  { %635 = vrot.lane.b32.xlu2 %v1452_v52, %s800_s10 }
 0x3f7   :  { %610 = vrot.lane.b32.xlu1 %v1454_v58, %s801_s7  ;;  %601 = vrot.lane.b32.xlu0 %v1454_v58, %s799_s24 }
 0x3f8   :  { %637 = vrot.lane.b32.xlu2 %v1454_v58, %s800_s10 }
 0x3ff   :  { %590 = vrot.lane.b32.xlu1 %v1452_v52, %s802_s25  ;;  %621 = vrot.lane.b32.xlu0 %v589_v57, %s798_s14 }
 0x400   :  { %657 = vrot.lane.b32.xlu2 %v589_v57, %s796_s5 }
 0x407   :  { %612 = vrot.lane.b32.xlu1 %v589_v57, %s801_s7  ;;  %592 = vrot.lane.b32.xlu0 %v1454_v58, %s802_s25 }
 0x408   :  { %617 = vrot.lane.b32.xlu2 %v1452_v52, %s798_s14 }
 0x40f   :  { %594 = vrot.lane.b32.xlu0 %v589_v57, %s802_s25 }
 0x410   :  { %626 = vrot.lane.b32.xlu2 %v1452_v52, %s797_s3 }
 0x418   :  { %648 = vrot.lane.b32.xlu2 %v589_v57, %s795_s13 }
 0x420   :  { %608 = vrot.lane.b32.xlu2 %v1452_v52, %s801_s7 }
 0x428   :  { %630 = vrot.lane.b32.xlu2 %v589_v57, %s797_s3 }
 0x430   :  { %603 = vrot.lane.b32.xlu2 %v589_v57, %s799_s24 }
 0x438   :  { %709 = vperm.xlu2 %787, %v706_v61  }
 0x43a   :  { %v654_v63 = vpop.permute.xlu2 %653 }
 0x442   :  { %v656_v2 = vpop.permute.xlu2 %655 }
 0x443   :  { %v660_v4 = vsel %vm659_vm13, %v654_v63, %v656_v2 }
 0x444   :  { %v701_v9 = vsel %vm1621_vm9, %v660_v4, %v665_v3  ;;  %vm1629_vm9 = vmmov %vm1622_vm0 }
 0x445   :  { %v717_v14 = vsel %vm716_vm14, %v701_v9, 0 }
 0x446   :  { %724 = vmatpush.bf16.msra.mxu3 %v717_v14 }
 0x44a   :  { %v636_v17 = vpop.permute.xlu2 %635 }
 0x451   :  { %v647_v18 = vpop.permute.xlu1 %646  ;;  %v645_v19 = vpop.permute.xlu0 %644 }
 0x452   :  { %v651_v20 = vsel %vm650_vm8, %v645_v19, %v647_v18  ;;  %v638_v6 = vpop.permute.xlu2 %637 }
 0x453   :  { %v642_v7 = vsel %vm641_vm5, %v636_v17, %v638_v6 }
 0x454   :  { %v693_v21 = vsel %vm1622_vm0, %v642_v7, %v651_v20 }
 0x455   :  { %725 = vmatpush.bf16.msra.mxu3 %v693_v21 }
 0x459   :  { %v620_v25 = vpop.permute.xlu0 %619  ;;  %v629_v26 = vpop.permute.xlu1 %628 }
 0x45a   :  { %v658_v29 = vpop.permute.xlu2 %657 }
 0x45b   :  { %v661_v31 = vsel %vm659_vm13, %v656_v2, %v658_v29  ;;  %vm712_vm13 = vcmask 621568  }
 0x45c   :  { %v704_v41 = vsel %vm1623_vm4, %v661_v31, %v666_v30 }
 0x45d   :  { %v719_v12 = vsel %vm716_vm14, %v704_v41, 0  ;;  %vm1628_vm14 = vmmov %vm1622_vm0 }
 0x45e   :  { %737 = vmatpush.bf16.msra.mxu0 %v719_v12 }
 0x461   :  { %v640_v13 = vpop.permute.xlu0 %639  ;;  %v600_v27 = vpop.permute.xlu1 %599 }
 0x462   :  { %v618_v53 = vpop.permute.xlu2 %617  ;;  %v643_v37 = vsel %vm641_vm5, %v638_v6, %v640_v13 }
 0x463   :  { %v624_v32 = vsel %vm623_vm7, %v618_v53, %v620_v25 }
 0x469   :  { %v602_v28 = vpop.permute.xlu0 %601  ;;  %v611_v34 = vpop.permute.xlu1 %610 }
 0x46a   :  { %v627_v8 = vpop.permute.xlu2 %626  ;;  %v606_v42 = vsel %vm605_vm1, %v600_v27, %v602_v28 }
 0x46b   :  { %v633_v33 = vsel %vm632_vm10, %v627_v8, %v629_v26 }
 0x46c   :  { %v685_v54 = vsel %vm1624_vm12, %v624_v32, %v633_v33 }
 0x46d   :  { %726 = vmatpush.bf16.msra.mxu3 %v685_v54 }
 0x471   :  { %v622_v16 = vpop.permute.xlu0 %621  ;;  %v591_v46 = vpop.permute.xlu1 %590 }
 0x472   :  { %v649_v24 = vpop.permute.xlu2 %648  ;;  %v625_v50 = vsel %vm623_vm7, %v620_v25, %v622_v16 }
 0x473   :  { %v652_v38 = vsel %vm650_vm8, %v647_v18, %v649_v24  ;;  %vm1630_vm8 = vmmov %vm1622_vm0 }
 0x474   :  { %v697_v15 = vsel %vm1625_vm2, %v643_v37, %v652_v38 }
 0x475   :  { %738 = vmatpush.bf16.msra.mxu0 %v697_v15 }
 0x479   :  { %v593_v10 = vpop.permute.xlu0 %592  ;;  %v613_v60 = vpop.permute.xlu1 %612 }
 0x47a   :  { %v609_v11 = vpop.permute.xlu2 %608  ;;  %v597_v35 = vsel %vm596_vm6, %v591_v46, %v593_v10  ;;  %v616_v36 = vsel %vm614_vm11, %v611_v34, %v613_v60 }
 0x47b   :  { %v615_v44 = vsel %vm614_vm11, %v609_v11, %v611_v34  ;;  %v669_v47 = vsel %vm1627_vm15, %v1452_v52, %v597_v35 }
 0x47c   :  { %v677_v55 = vsel %vm1626_vm3, %v606_v42, %v615_v44 }
 0x47d   :  { %727 = vmatpush.bf16.msra.mxu3 %v677_v55 }
 0x481   :  { %728 = vmatpush.bf16.msra.mxu3 %v669_v47  ;;  %v595_v40 = vpop.permute.xlu0 %594 }
 0x482   :  { %v631_v49 = vpop.permute.xlu2 %630  ;;  %v598_v45 = vsel %vm596_vm6, %v593_v10, %v595_v40 }
 0x483   :  { %v634_v51 = vsel %vm632_vm10, %v629_v26, %v631_v49  ;;  %v673_v59 = vsel %vm1630_vm8, %v1454_v58, %v598_v45 }
 0x484   :  { %774 = vmatmul.msk.bf16.vlgmr.msra.gmra.mxu3 %vm712_vm13, %v705_v48  ;;  %v689_v23 = vsel %vm1628_vm14, %v625_v50, %v634_v51 }
 0x485   :  { %739 = vmatpush.bf16.msra.mxu0 %v689_v23 }
 0x48a   :  { %v604_v5 = vpop.permute.xlu2 %603 }
 0x48b   :  { %v607_v39 = vsel %vm605_vm1, %v602_v28, %v604_v5 }
 0x48c   :  { %v681_v52 = vsel %vm1629_vm9, %v607_v39, %v616_v36 }
 0x48d   :  { %740 = vmatpush.bf16.msra.mxu0 %v681_v52 }
 0x491   :  { %741 = vmatpush.bf16.msra.mxu0 %v673_v59 }
 0x492   :  { %v710_v56 = vpop.permute.xlu2 %709 }
 0x494   :  { %775 = vmatmul.msk.bf16.vlgmr.msra.gmra.mxu0 %vm712_vm13, %v705_v48 }
 0x507   :  { %v730_v57 = vpop.f32.mrf.mxu3 }
 0x508   :  { %v731_v61 = vadd.f32 %v730_v57, %v710_v56 }
 0x50a   :  { %747 = vst [vmem:[%s1536_s16] sm:$0xff] %v731_v61 }
 0x50f   :  { %v732_v62 = vpop.f32.mrf.mxu3 }
 0x511   :  { %v743_v43 = vpop.f32.mrf.mxu0 }
 0x512   :  { %v744_v63 = vadd.f32 %v743_v43, %v710_v56 }
 0x514   :  { %748 = vst [vmem:[%s1536_s16 + $0x8] sm:$0xff] %v744_v63 }
 0x519   :  { %v745_v0 = vpop.f32.mrf.mxu0 }

</bundles_post_ra>
